<compile_context>
chip_gen: v5e
topology: v5e:2x2
jax: 0.10.0
libtpu: 0.0.40
codegen_flags: <defaults>
</compile_context>

<pallas_src>
import jax
import jax.numpy as jnp
from jax.experimental import pallas as pl
from jax.experimental.pallas import tpu as pltpu


def _round_up(a, b):
    return ((a + b - 1) // b) * b


def _proj_kernel(x_ref, w_ref, b_ref, o_ref):
    # x_ref: (TMp, Kp) streamed tile.  w_ref: (Kp, Np), b_ref: (1, Np) have constant block
    # indices -> fetched once, VMEM-resident.  MXU matmul with f32 accumulation, bias add (VPU).
    acc = jnp.dot(x_ref[...], w_ref[...], preferred_element_type=jnp.float32)
    o_ref[...] = (acc + b_ref[...]).astype(o_ref.dtype)


def input_projector(x, weight, bias, window_length, *, block_rows=4096,
                    vmem_budget_bytes=24 * 1024 * 1024, kp_budget=4096,
                    out_dtype=None, force_pallas=False):
    """Conv1d(kernel=W, stride=W) along time.

    x: (B, T, C_in), weight: (C_out, C_in, W), bias: (C_out,) -> (B, T//W, C_out).
    """
    B, T, C_in = x.shape
    C_out = weight.shape[0]
    W = window_length
    Tw = T // W
    T_used = Tw * W
    if T_used != T:                         # Conv1d drops the ragged tail
        x = x[:, :T_used, :]
    M = B * Tw                              # GEMM rows (one per window)
    K = W * C_in                            # contraction per window, (k, c) ordering
    out_dtype = x.dtype if out_dtype is None else out_dtype

    # GEMM view (free, row-major-compatible reshapes).
    x_flat = x.reshape(M, K)
    w_mat = jnp.transpose(weight, (2, 1, 0)).reshape(K, C_out)   # row k*C_in + c matches x rows

    # Tiny-problem fallback: pallas launch/step overhead beats any kernel win here.
    if not force_pallas and (M * K * C_out) < (1 << 20):
        out = (jnp.dot(x_flat, w_mat) + bias[None, :]).astype(out_dtype)
        return out.reshape(B, Tw, C_out)

    # ---- lane-dense packing: G windows per GEMM row via a block-diagonal weight ----
    if C_out >= 128:
        Cp = _round_up(C_out, 128)          # pad columns -> unmasked, lane-dense stores
        G = 1
    else:
        Cp = max(1, 1 << (C_out - 1).bit_length())   # next power of two >= C_out (divides 128)
        while Cp < 128 and (128 // Cp) * K > kp_budget:
            Cp *= 2                          # cap Kp so the block-diag weight stays small
        G = 128 // Cp
    Kp = G * K
    Np = G * Cp                              # always a multiple of 128

    if Cp != C_out:
        w_mat = jnp.pad(w_mat, ((0, 0), (0, Cp - C_out)))
    w_bd = jnp.kron(jnp.eye(G, dtype=w_mat.dtype), w_mat) if G > 1 else w_mat
    w_bd = w_bd.astype(x.dtype)              # f32 for f32 inputs (fidelity; mem-bound anyway)
    bias_p = bias.astype(jnp.float32)
    if Cp != C_out:
        bias_p = jnp.pad(bias_p, (0, Cp - C_out))
    b_packed = jnp.tile(bias_p, G).reshape(1, Np)

    # ---- tile sizing: VMEM-budget aware, (near-)exact coverage, >=2 grid steps when possible ----
    x_bytes = x.dtype.itemsize
    o_bytes = jnp.dtype(out_dtype).itemsize
    w_bytes = w_bd.dtype.itemsize

    Mp0 = -(-M // G)                                             # packed rows needed
    per_row_bytes = 2 * Kp * x_bytes + 2 * Np * o_bytes          # double-buffered in + out
    weight_bytes = 2 * Kp * Np * w_bytes                         # conservative (double-buffered)
    rows_cap = max(8, (vmem_budget_bytes - weight_bytes) // per_row_bytes)
    rows_cap = min(int(rows_cap), block_rows)
    rows_cap = max(8, (rows_cap // 8) * 8)

    n_tiles = max(1, -(-Mp0 // rows_cap))
    if Mp0 >= 16:
        n_tiles = max(n_tiles, 2)            # pipeline overlap + v7x 2-TC ("parallel") sharding
    TMp = _round_up(-(-Mp0 // n_tiles), 8)
    Mp = TMp * n_tiles
    M_pad = Mp * G

    if M_pad != M:                           # only pad when actually required (usually a no-op)
        x_flat = jnp.pad(x_flat, ((0, M_pad - M), (0, 0)))
    x_packed = x_flat.reshape(Mp, Kp)        # free reshape (row-major identity)

    vmem_need = (2 * TMp * Kp * x_bytes + 2 * TMp * Np * o_bytes
                 + 2 * Kp * Np * w_bytes + 2 * Np * 4)
    vmem_limit = int(min(60 * 1024 * 1024,
                         max(vmem_need + (2 << 20), 16 * 1024 * 1024)))

    cost = pl.CostEstimate(
        flops=2 * Mp * Kp * Np,
        transcendentals=0,
        bytes_accessed=(Mp * Kp * x_bytes + Kp * Np * w_bytes + Np * 4 + Mp * Np * o_bytes),
    )

    out_packed = pl.pallas_call(
        _proj_kernel,
        out_shape=jax.ShapeDtypeStruct((Mp, Np), out_dtype),
        grid_spec=pltpu.PrefetchScalarGridSpec(
            num_scalar_prefetch=0,
            grid=(Mp // TMp,),
            in_specs=[
                pl.BlockSpec((TMp, Kp), lambda i: (i, 0)),   # streamed x tiles
                pl.BlockSpec((Kp, Np), lambda i: (0, 0)),    # weight: DMA'd once, resident
                pl.BlockSpec((1, Np), lambda i: (0, 0)),     # bias: resident
            ],
            out_specs=pl.BlockSpec((TMp, Np), lambda i: (i, 0)),
        ),
        compiler_params=pltpu.CompilerParams(
            dimension_semantics=("parallel",),               # megacore-shardable on v7x
            vmem_limit_bytes=vmem_limit,
        ),
        cost_estimate=cost,
    )(x_packed, w_bd, b_packed)

    # Packed output unpacks to (Mp*G, Cp) for free; slice only if padding was introduced.
    out_flat = out_packed.reshape(Mp * G, Cp)
    if M_pad != M or Cp != C_out:
        out_flat = out_flat[:M, :C_out]
    return out_flat.reshape(B, Tw, C_out)


if __name__ == "__main__":
    key = jax.random.PRNGKey(0)
    ks = jax.random.split(key, 9)

    def ref_fn(x_, w_, b_, W_):
        B_, T_, Ci_ = x_.shape
        return jnp.einsum("btkc,ock->bto",
                          x_.reshape(B_, T_ // W_, W_, Ci_), w_,
                          precision=jax.lax.Precision.HIGHEST) + b_[None, None, :]

    # --- small shape consistent with the module forward (B=2, T=16, C_in=4, C_out=32, W=4) ---
    B, T, C_in, C_out, W = 2, 16, 4, 32, 4
    x = jax.random.normal(ks[0], (B, T, C_in), dtype=jnp.float32)
    w = 0.1 * jax.random.normal(ks[1], (C_out, C_in, W), dtype=jnp.float32)
    b = 0.1 * jax.random.normal(ks[2], (C_out,), dtype=jnp.float32)
    out = jax.block_until_ready(input_projector(x, w, b, W, force_pallas=True))
    assert out.shape == (B, T // W, C_out)
    assert jnp.allclose(out, ref_fn(x, w, b, W), atol=1e-2, rtol=1e-2), "small-case mismatch"

    # --- larger case: multi-step grid, exact tile coverage (no padded rows) ---
    B2, T2, Ci2, Co2, W2 = 3, 4096, 8, 32, 4
    x2 = jax.random.normal(ks[3], (B2, T2, Ci2), dtype=jnp.float32)
    w2 = 0.1 * jax.random.normal(ks[4], (Co2, Ci2, W2), dtype=jnp.float32)
    b2 = 0.1 * jax.random.normal(ks[5], (Co2,), dtype=jnp.float32)
    out2 = jax.block_until_ready(input_projector(x2, w2, b2, W2))
    assert out2.shape == (B2, T2 // W2, Co2)
    assert jnp.allclose(out2, ref_fn(x2, w2, b2, W2), atol=1e-2, rtol=1e-2), "large-case mismatch"

    # --- ragged C_out (24 does not divide 128): lane-padding path, still unmasked stores ---
    B3, T3, Ci3, Co3, W3 = 2, 32, 3, 24, 8
    x3 = jax.random.normal(ks[6], (B3, T3, Ci3), dtype=jnp.float32)
    w3 = 0.1 * jax.random.normal(ks[7], (Co3, Ci3, W3), dtype=jnp.float32)
    b3 = 0.1 * jax.random.normal(ks[8], (Co3,), dtype=jnp.float32)
    out3 = jax.block_until_ready(input_projector(x3, w3, b3, W3, force_pallas=True))
    assert out3.shape == (B3, T3 // W3, Co3)
    assert jnp.allclose(out3, ref_fn(x3, w3, b3, W3), atol=1e-2, rtol=1e-2), "ragged-case mismatch"

    print("KERNEL_OK")
</pallas_src>

<mosaic_0001>
module attributes {stable_mosaic.version = 11 : i64} {
  func.func @_proj_kernel(%arg0: i32, %arg1: memref<8x64xf32, #tpu.memory_space<vmem>>, %arg2: memref<64x128xf32, #tpu.memory_space<vmem>>, %arg3: memref<1x128xf32, #tpu.memory_space<vmem>>, %arg4: memref<8x128xf32, #tpu.memory_space<vmem>>) attributes {dimension_semantics = [#tpu.dimension_semantics<parallel>], iteration_bounds = array<i64: 1>, scalar_prefetch = 0 : i64, scratch_operands = 0 : i64, tpu.core_type = #tpu.core_type<tc>, window_params = [{transform_indices = @transform_0, window_bounds = array<i64: 8, 64>}, {pipeline_mode = #tpu.pipeline_mode<synchronous>, transform_indices = @transform_1, window_bounds = array<i64: 64, 128>}, {pipeline_mode = #tpu.pipeline_mode<synchronous>, transform_indices = @transform_2, window_bounds = array<i64: 1, 128>}, {transform_indices = @transform_3, window_bounds = array<i64: 8, 128>}]} {
    %c0 = arith.constant 0 : index
    %c0_0 = arith.constant 0 : index
    %0 = vector.load %arg1[%c0, %c0_0] : memref<8x64xf32, #tpu.memory_space<vmem>>, vector<8x64xf32>
    %c0_1 = arith.constant 0 : index
    %c0_2 = arith.constant 0 : index
    %1 = vector.load %arg2[%c0_1, %c0_2] : memref<64x128xf32, #tpu.memory_space<vmem>>, vector<64x128xf32>
    %cst = arith.constant dense<0.000000e+00> : vector<8x128xf32>
    %2 = tpu.matmul %0, %1, %cst {dimension_numbers = #tpu.dot_dimension_numbers<[1], [0], [0], [1], [0, 0, 1, 1], [], []>} : vector<8x64xf32>, vector<64x128xf32>, vector<8x128xf32> -> vector<8x128xf32>
    %c0_3 = arith.constant 0 : index
    %c0_4 = arith.constant 0 : index
    %3 = vector.load %arg3[%c0_3, %c0_4] : memref<1x128xf32, #tpu.memory_space<vmem>>, vector<1x128xf32>
    %4 = vector.broadcast %3 : vector<1x128xf32> to vector<8x128xf32>
    %5 = arith.addf %2, %4 : vector<8x128xf32>
    %c0_5 = arith.constant 0 : index
    %c0_6 = arith.constant 0 : index
    %6 = vector.load %arg4[%c0_5, %c0_6] : memref<8x128xf32, #tpu.memory_space<vmem>>, vector<8x128xf32>
    tpu.vector_store %arg4[%c0_5, %c0_6], %5 {strides = array<i32>} : memref<8x128xf32, #tpu.memory_space<vmem>>, vector<8x128xf32>,
    return
  }
  func.func @transform_0(%arg0: i32) -> (i32, i32) {
    %c0_i32 = arith.constant 0 : i32
    %c0_i32_0 = arith.constant 0 : i32
    return %arg0, %c0_i32 : i32, i32
  }
  func.func @transform_1(%arg0: i32) -> (i32, i32) {
    %c0_i32 = arith.constant 0 : i32
    %c0_i32_0 = arith.constant 0 : i32
    %c0_i32_1 = arith.constant 0 : i32
    return %c0_i32, %c0_i32_0 : i32, i32
  }
  func.func @transform_2(%arg0: i32) -> (i32, i32) {
    %c0_i32 = arith.constant 0 : i32
    %c0_i32_0 = arith.constant 0 : i32
    %c0_i32_1 = arith.constant 0 : i32
    return %c0_i32, %c0_i32_0 : i32, i32
  }
  func.func @transform_3(%arg0: i32) -> (i32, i32) {
    %c0_i32 = arith.constant 0 : i32
    %c0_i32_0 = arith.constant 0 : i32
    return %arg0, %c0_i32 : i32, i32
  }
}

</mosaic_0001>

<bundles_post_ra>
// kernel: tpu_custom_call.1
= control target key start
LH: loop header
LB: loop body
LE: loop exit
PB: predicated region body
PF: predicated region fallthrough
CT: control target
= control target key end

     0   :  { %8 = vsyncpa [#allocation3], 0  ;;  %s223_s0 = inlined_call_operand.hbm [shape: f32[8,64], index: 0, kind: input, shape index: {}]   ;;  %s224_s1 = inlined_call_operand.hbm [shape: f32[64,128], index: 1, kind: input, shape index: {}]   ;;  %s225_s2 = inlined_call_operand.vmem [shape: f32[1,128], index: 2, kind: input, shape index: {}]   ;;  %s226_s3 = inlined_call_operand.hbm [shape: f32[8,128], index: 3, kind: output, shape index: {}]  }
   0x1   :  { %9 = vsyncpa [#allocation6], 0 }
   0x2   :  { %10 = vsyncpa [#allocation4], 0  ;;  %s16_s14 = sshll.u32 %s223_s0, 4  ;;  %s186_s15 = smov [#allocation2]   ;;  %s17_s14 = int_to_ptr.hbm [resolvable:$true] %s16_s14 }
   0x3   :  { %s18_s16 = sshll.u32 %s186_s15, 4  ;;  %s26_s19 = sshll.u32 %s224_s1, 4  ;;  %s19_s16 = int_to_ptr.vmem [resolvable:$true] %s18_s16  ;;  %s27_s19 = int_to_ptr.hbm [resolvable:$true] %s26_s19 }
   0x4   :  { %21 = dma.hbm_to_vmem [thread:$0]  %s17_s14, 128, %s19_s16, [#allocation3]  }
   0x5   :  { %s187_s20 = smov [#allocation5]   ;;  %s188_s22 = smov 128  }
   0x6   :  { %s28_s21 = sshll.u32 %s187_s20, 4  ;;  %s189_s23 = smov 8   ;;  %s29_s21 = int_to_ptr.vmem [resolvable:$true] %s28_s21 }
   0x7   :  { %34 = dma.hbm_to_vmem [thread:$0]  %s27_s19, 1024, %s29_s21, [#allocation6], %s188_s22, %s188_s22, %s189_s23  }
   0x8   :  { %180 = dma.done.wait [#allocation3], 128  }
   0x9   :  { %181 = vsyncadd [#allocation3], 4294967168 }
   0xa   :  { %182 = dma.done.wait [#allocation6], 1024  }
   0xb   :  { %183 = vsyncadd [#allocation6], 4294966272  ;;  %v53_v0 = vld [vmem:[#allocation5 + $0x38] sm:$0xff]  ;;  %v52_v1 = vld [vmem:[#allocation5 + $0x30] sm:$0xff]  ;;  %vm58_vm0 = vcmask 523264   ;;  %s190_s24 = smov [#allocation7]  }
   0xc   :  { %70 = vmatpush.msra.mxu0 %v53_v0  ;;  %v51_v2 = vld [vmem:[#allocation5 + $0x28] sm:$0xff]  ;;  %v50_v3 = vld [vmem:[#allocation5 + $0x20] sm:$0xff]  ;;  %v49_v4 = vld [vmem:[#allocation5 + $0x18] sm:$0xff]  ;;  %s88_s25 = sshll.u32 %s190_s24, 4  ;;  %s90_s28 = sshll.u32 %s226_s3, 4  ;;  %s89_s25 = int_to_ptr.vmem [resolvable:$true] %s88_s25  ;;  %s91_s28 = int_to_ptr.hbm [resolvable:$true] %s90_s28 }
   0xd   :  { %v48_v5 = vld [vmem:[#allocation5 + $0x10] sm:$0xff]  ;;  %v47_v6 = vld [vmem:[#allocation5 + $0x8] sm:$0xff]  ;;  %v46_v7 = vld [vmem:[#allocation5] sm:$0xff] }
   0xe   :  { %71 = vmatpush.msra.mxu0 %v52_v1  ;;  %v45_v8 = vld [vmem:[#allocation2] sm:$0xff] }
   0xf   :  { %v107_v9 = vld [vmem:[%s225_s2] ss:$0 sm:$0xff] }
  0x10   :  { %72 = vmatpush.msra.mxu0 %v51_v2 }
  0x12   :  { %73 = vmatpush.msra.mxu0 %v50_v3 }
  0x14   :  { %74 = vmatpush.msra.mxu0 %v49_v4 }
  0x16   :  { %75 = vmatpush.msra.mxu0 %v48_v5 }
  0x18   :  { %76 = vmatpush.msra.mxu0 %v47_v6 }
  0x1a   :  { %77 = vmatpush.msra.mxu0 %v46_v7 }
  0x1b   :  { %101 = vmatmul.msk.f32.vlgmr.msra.gmra.mxu0 %vm58_vm0, %v45_v8 }
  0x98   :  { %v79_v10 = vpop.f32.mrf.mxu0 }
  0x99   :  { %v80_v11 = vadd.f32 %v107_v9, %v79_v10 }
  0x9b   :  { %82 = vst [vmem:[#allocation7] sm:$0xff] %v80_v11 }
  0x9c   :  { %93 = dma.vmem_to_hbm [thread:$0]  %s89_s25, 128, %s91_s28, [#allocation4]  }
  0x9d   :  { %184 = dma.done.wait [#allocation4], 128  }
  0x9e   :  { %185 = vsyncadd [#allocation4], 4294967168 }
  0x9f   :  { %98 = vsyncpa [#allocation3], 1 }
  0xa0   :  { %99 = vsyncpa [#allocation6], 1 }
  0xa1   :  { %100 = vsyncpa [#allocation4], 1 }

</bundles_post_ra>
